<compile_context>
chip_gen: v5e
topology: v5e:2x2
jax: 0.10.0
libtpu: 0.0.40
codegen_flags: <defaults>
</compile_context>

<pallas_src>
import jax
import jax.numpy as jnp
from jax.experimental import pallas as pl
from jax.experimental.pallas import tpu as pltpu


def _fused_rnd_kernel(x_ref, w1_ref, b1_ref, w2_ref, b2_ref, o_t_ref, o_p_ref):
    # x: [TB, I], w1: [I, 2H], b1: [1, 2H], w2: [2H, 2O] (block-diag), b2: [1, 2O]
    x = x_ref[...]
    h = jnp.dot(x, w1_ref[...], preferred_element_type=jnp.float32) + b1_ref[...]
    # LeakyReLU (PyTorch default negative_slope = 0.01): mul + max (2 VPU ops)
    h = jnp.maximum(h, 0.01 * h)
    out = jnp.dot(h, w2_ref[...], preferred_element_type=jnp.float32) + b2_ref[...]
    o = o_t_ref.shape[-1]
    o_t_ref[...] = out[:, :o].astype(o_t_ref.dtype)
    o_p_ref[...] = out[:, o:].astype(o_p_ref.dtype)


def _round_up(n, m):
    return ((n + m - 1) // m) * m


def _detect_num_tensorcores():
    """2 TensorCores per chip on v7x, 1 on v5e/v6e. Best-effort, never raises."""
    try:
        kind = getattr(jax.devices()[0], "device_kind", "") or ""
        if "v7" in kind.lower():
            return 2
    except Exception:
        pass
    return 1


def rnd_forward_fused(x, fused_params, *, output_size=16,
                      single_tile_max=4096, tb_cap=4096, num_tc=None):
    """Fused RND forward. Returns (target_out, predictor_out), each [B, output_size]."""
    w1c, b1c, w2c, b2c = fused_params
    B, I = x.shape
    H2 = w1c.shape[1]            # 2 * hidden_size  (128)
    O2 = w2c.shape[1]            # 2 * output_size  (32)
    O = output_size

    out_shape = (jax.ShapeDtypeStruct((B, O), x.dtype),
                 jax.ShapeDtypeStruct((B, O), x.dtype))

    if B <= single_tile_max:
        # Single un-gridded invocation: no per-grid-step overhead at all.
        vmem = pl.BlockSpec(memory_space=pltpu.MemorySpace.VMEM)
        t_out, p_out = pl.pallas_call(
            _fused_rnd_kernel,
            out_shape=out_shape,
            in_specs=[vmem, vmem, vmem, vmem, vmem],
            out_specs=(vmem, vmem),
        )(x, w1c, b1c, w2c, b2c)
        return t_out, p_out

    # Rollout-sized batch: tile the batch axis. Aim for exactly one big tile
    # per TensorCore (v7x megacore) but cap the tile so VMEM stays comfortable.
    if num_tc is None:
        num_tc = _detect_num_tensorcores()
    tb = min(_round_up(pl.cdiv(B, num_tc), 8), tb_cap)
    grid = (pl.cdiv(B, tb),)

    t_out, p_out = pl.pallas_call(
        _fused_rnd_kernel,
        out_shape=out_shape,
        grid_spec=pltpu.PrefetchScalarGridSpec(
            num_scalar_prefetch=0,
            grid=grid,
            in_specs=[
                pl.BlockSpec((tb, I), lambda i: (i, 0)),
                pl.BlockSpec((I, H2), lambda i: (0, 0)),   # weights resident
                pl.BlockSpec((1, H2), lambda i: (0, 0)),
                pl.BlockSpec((H2, O2), lambda i: (0, 0)),
                pl.BlockSpec((1, O2), lambda i: (0, 0)),
            ],
            out_specs=(pl.BlockSpec((tb, O), lambda i: (i, 0)),
                       pl.BlockSpec((tb, O), lambda i: (i, 0))),
        ),
        compiler_params=pltpu.CompilerParams(
            dimension_semantics=("parallel",),
            vmem_limit_bytes=32 * 1024 * 1024,
        ),
    )(x, w1c, b1c, w2c, b2c)
    return t_out, p_out


def build_fused_params(target_params, predictor_params):
    """Concatenate / block-diagonalize the two MLPs' weights ONCE at init."""
    t_w1, t_b1, t_w2, t_b2 = target_params
    p_w1, p_b1, p_w2, p_b2 = predictor_params
    H = t_w1.shape[1]
    O = t_w2.shape[1]
    w1c = jnp.concatenate([t_w1, p_w1], axis=1)                  # [I, 2H]
    b1c = jnp.concatenate([t_b1, p_b1], axis=1)                  # [1, 2H]
    w2c = jnp.zeros((2 * H, 2 * O), jnp.float32)
    w2c = w2c.at[:H, :O].set(t_w2).at[H:, O:].set(p_w2)          # block-diag [2H, 2O]
    b2c = jnp.concatenate([t_b2, p_b2], axis=1)                  # [1, 2O]
    return w1c, b1c, w2c, b2c


def init_rnd_params(key, input_size=17, hidden_size=64, output_size=16):
    k_t1, k_t2, k_p1w, k_p1b, k_p2w, k_p2b = jax.random.split(key, 6)

    # target_net: weights ~ N(0, 1), biases = 0 (matches the PyTorch __init__)
    t_w1 = jax.random.normal(k_t1, (input_size, hidden_size), jnp.float32)
    t_b1 = jnp.zeros((1, hidden_size), jnp.float32)
    t_w2 = jax.random.normal(k_t2, (hidden_size, output_size), jnp.float32)
    t_b2 = jnp.zeros((1, output_size), jnp.float32)

    # predictor_net: PyTorch default Linear init (uniform(+-1/sqrt(fan_in)))
    bound1 = 1.0 / jnp.sqrt(jnp.float32(input_size))
    p_w1 = jax.random.uniform(k_p1w, (input_size, hidden_size), jnp.float32,
                              -bound1, bound1)
    p_b1 = jax.random.uniform(k_p1b, (1, hidden_size), jnp.float32,
                              -bound1, bound1)
    bound2 = 1.0 / jnp.sqrt(jnp.float32(hidden_size))
    p_w2 = jax.random.uniform(k_p2w, (hidden_size, output_size), jnp.float32,
                              -bound2, bound2)
    p_b2 = jax.random.uniform(k_p2b, (1, output_size), jnp.float32,
                              -bound2, bound2)

    target_params = (t_w1, t_b1, t_w2, t_b2)
    predictor_params = (p_w1, p_b1, p_w2, p_b2)
    return target_params, predictor_params


def _ref_mlp(x, w1, b1, w2, b2):
    h = x @ w1 + b1
    h = jnp.where(h > 0, h, 0.01 * h)
    return h @ w2 + b2


if __name__ == "__main__":
    key = jax.random.PRNGKey(0)
    k_params, k_x_small, k_x_mid = jax.random.split(key, 3)

    input_size, hidden_size, output_size = 17, 64, 16

    target_params, predictor_params = init_rnd_params(
        k_params, input_size, hidden_size, output_size)
    fused_params = build_fused_params(target_params, predictor_params)

    # --- small-batch path (single un-gridded pallas_call) ---
    batch = 8
    x = jax.random.normal(k_x_small, (batch, input_size), jnp.float32)
    t_out, p_out = rnd_forward_fused(x, fused_params, output_size=output_size)
    jax.block_until_ready((t_out, p_out))

    ref_t = _ref_mlp(x, *target_params)
    ref_p = _ref_mlp(x, *predictor_params)
    assert t_out.shape == (batch, output_size)
    assert p_out.shape == (batch, output_size)
    assert jnp.allclose(t_out, ref_t, atol=1e-4, rtol=1e-4)
    assert jnp.allclose(p_out, ref_p, atol=1e-4, rtol=1e-4)

    # --- gridded path exercised at small scale (thresholds lowered on purpose;
    #     default thresholds route anything below 4096 rows to the single-tile
    #     path) ---
    mid_batch = 200
    x_mid = jax.random.normal(k_x_mid, (mid_batch, input_size), jnp.float32)
    t_mid, p_mid = rnd_forward_fused(
        x_mid, fused_params, output_size=output_size,
        single_tile_max=64, tb_cap=64)
    jax.block_until_ready((t_mid, p_mid))

    ref_tm = _ref_mlp(x_mid, *target_params)
    ref_pm = _ref_mlp(x_mid, *predictor_params)
    assert t_mid.shape == (mid_batch, output_size)
    assert p_mid.shape == (mid_batch, output_size)
    assert jnp.allclose(t_mid, ref_tm, atol=1e-4, rtol=1e-4)
    assert jnp.allclose(p_mid, ref_pm, atol=1e-4, rtol=1e-4)

    print("KERNEL_OK")
</pallas_src>

<mosaic_0001>
module attributes {stable_mosaic.version = 11 : i64} {
  func.func @_fused_rnd_kernel(%arg0: memref<8x17xf32, #tpu.memory_space<vmem>>, %arg1: memref<17x128xf32, #tpu.memory_space<vmem>>, %arg2: memref<1x128xf32, #tpu.memory_space<vmem>>, %arg3: memref<128x32xf32, #tpu.memory_space<vmem>>, %arg4: memref<1x32xf32, #tpu.memory_space<vmem>>, %arg5: memref<8x16xf32, #tpu.memory_space<vmem>>, %arg6: memref<8x16xf32, #tpu.memory_space<vmem>>) attributes {dimension_semantics = [], scalar_prefetch = 0 : i64, scratch_operands = 0 : i64, tpu.core_type = #tpu.core_type<tc>} {
    %c0 = arith.constant 0 : index
    %c0_0 = arith.constant 0 : index
    %0 = vector.load %arg0[%c0, %c0_0] : memref<8x17xf32, #tpu.memory_space<vmem>>, vector<8x17xf32>
    %c0_1 = arith.constant 0 : index
    %c0_2 = arith.constant 0 : index
    %1 = vector.load %arg1[%c0_1, %c0_2] : memref<17x128xf32, #tpu.memory_space<vmem>>, vector<17x128xf32>
    %cst = arith.constant dense<0.000000e+00> : vector<8x128xf32>
    %2 = tpu.matmul %0, %1, %cst {dimension_numbers = #tpu.dot_dimension_numbers<[1], [0], [0], [1], [0, 0, 1, 1], [], []>} : vector<8x17xf32>, vector<17x128xf32>, vector<8x128xf32> -> vector<8x128xf32>
    %c0_3 = arith.constant 0 : index
    %c0_4 = arith.constant 0 : index
    %3 = vector.load %arg2[%c0_3, %c0_4] : memref<1x128xf32, #tpu.memory_space<vmem>>, vector<1x128xf32>
    %4 = vector.broadcast %3 : vector<1x128xf32> to vector<8x128xf32>
    %5 = arith.addf %2, %4 : vector<8x128xf32>
    %cst_5 = arith.constant 0.00999999977 : f32
    %6 = vector.broadcast %cst_5 : f32 to vector<8x128xf32>
    %7 = arith.mulf %6, %5 : vector<8x128xf32>
    %8 = arith.maximumf %5, %7 : vector<8x128xf32>
    %c0_6 = arith.constant 0 : index
    %c0_7 = arith.constant 0 : index
    %9 = vector.load %arg3[%c0_6, %c0_7] : memref<128x32xf32, #tpu.memory_space<vmem>>, vector<128x32xf32>
    %cst_8 = arith.constant dense<0.000000e+00> : vector<8x32xf32>
    %10 = tpu.matmul %8, %9, %cst_8 {dimension_numbers = #tpu.dot_dimension_numbers<[1], [0], [0], [1], [0, 0, 1, 1], [], []>} : vector<8x128xf32>, vector<128x32xf32>, vector<8x32xf32> -> vector<8x32xf32>
    %c0_9 = arith.constant 0 : index
    %c0_10 = arith.constant 0 : index
    %11 = vector.load %arg4[%c0_9, %c0_10] : memref<1x32xf32, #tpu.memory_space<vmem>>, vector<1x32xf32>
    %12 = vector.broadcast %11 : vector<1x32xf32> to vector<8x32xf32>
    %13 = arith.addf %10, %12 : vector<8x32xf32>
    %14 = vector.extract_strided_slice %13 {offsets = [0, 0], sizes = [8, 16], strides = [1, 1]} : vector<8x32xf32> to vector<8x16xf32>
    %c0_11 = arith.constant 0 : index
    %c0_12 = arith.constant 0 : index
    %15 = vector.load %arg5[%c0_11, %c0_12] : memref<8x16xf32, #tpu.memory_space<vmem>>, vector<8x16xf32>
    tpu.vector_store %arg5[%c0_11, %c0_12], %14 {strides = array<i32>} : memref<8x16xf32, #tpu.memory_space<vmem>>, vector<8x16xf32>,
    %16 = vector.extract_strided_slice %13 {offsets = [0, 16], sizes = [8, 16], strides = [1, 1]} : vector<8x32xf32> to vector<8x16xf32>
    %c0_13 = arith.constant 0 : index
    %c0_14 = arith.constant 0 : index
    %17 = vector.load %arg6[%c0_13, %c0_14] : memref<8x16xf32, #tpu.memory_space<vmem>>, vector<8x16xf32>
    tpu.vector_store %arg6[%c0_13, %c0_14], %16 {strides = array<i32>} : memref<8x16xf32, #tpu.memory_space<vmem>>, vector<8x16xf32>,
    return
  }
}

</mosaic_0001>

<bundles_post_ra>
// kernel: tpu_custom_call.1
= control target key start
LH: loop header
LB: loop body
LE: loop exit
PB: predicated region body
PF: predicated region fallthrough
CT: control target
= control target key end

     0   :  { %12 = vsyncpa [#allocation3], 0  ;;  %vm36_vm0 = vcmask 1040384   ;;  %vm32_vm1 = vcmask 138240   ;;  %s310_s0 = inlined_call_operand.vmem [shape: f32[8,17], index: 0, kind: input, shape index: {}]   ;;  %s311_s1 = inlined_call_operand.vmem [shape: f32[17,128], index: 1, kind: input, shape index: {}]   ;;  %s312_s2 = inlined_call_operand.vmem [shape: f32[1,128], index: 2, kind: input, shape index: {}]   ;;  %s313_s3 = inlined_call_operand.vmem [shape: f32[128,32], index: 3, kind: input, shape index: {}]   ;;  %s314_s4 = inlined_call_operand.vmem [shape: f32[1,32], index: 4, kind: input, shape index: {}]   ;;  %s315_s5 = inlined_call_operand.hbm [shape: f32[8,16], index: 5, kind: output, shape index: {0}]   ;;  %s316_s6 = inlined_call_operand.hbm [shape: f32[8,16], index: 6, kind: output, shape index: {1}]  }
   0x1   :  { %v27_v0 = vld [vmem:[%s311_s1 + $0x10] sm:$0x1]  ;;  %v26_v1 = vld [vmem:[%s311_s1 + $0x8] sm:$0xff]  ;;  %v77_v2 = vld [vmem:[%s313_s3 + $0x78] sm:$0xff] }
   0x2   :  { %141 = vmatpush.msk.msra.mxu0 %vm36_vm0, %v27_v0  ;;  %v76_v3 = vld [vmem:[%s313_s3 + $0x70] sm:$0xff]  ;;  %v25_v4 = vld [vmem:[%s311_s1] sm:$0xff]  ;;  %82 = vmatpush.msra.mxu1 %v77_v2  ;;  %v75_v6 = vld [vmem:[%s313_s3 + $0x68] sm:$0xff] }
   0x3   :  { %v24_v5 = vld [vmem:[%s310_s0] sm:$0xff] }
   0x4   :  { %54 = vmatpush.msra.mxu0 %v26_v1  ;;  %83 = vmatpush.msra.mxu1 %v76_v3  ;;  %v74_v7 = vld [vmem:[%s313_s3 + $0x60] sm:$0xff] }
   0x6   :  { %55 = vmatpush.msra.mxu0 %v25_v4  ;;  %84 = vmatpush.msra.mxu1 %v75_v6 }
   0x7   :  { %142 = vmatmul.msk.f32.vlgmr.msra.gmra.mxu0 %vm32_vm1, %v24_v5 }
   0x8   :  { %13 = vsyncpa [#allocation5], 0  ;;  %v73_v8 = vld [vmem:[%s313_s3 + $0x58] sm:$0xff]  ;;  %85 = vmatpush.msra.mxu1 %v74_v7  ;;  %v72_v9 = vld [vmem:[%s313_s3 + $0x50] sm:$0xff]  ;;  %s200_s0 = smov [#allocation2]   ;;  %vm102_vm2 = vcmask 130048  }
   0x9   :  { %v71_v10 = vld [vmem:[%s313_s3 + $0x48] sm:$0xff]  ;;  %v70_v11 = vld [vmem:[%s313_s3 + $0x40] sm:$0xff]  ;;  %v69_v12 = vld [vmem:[%s313_s3 + $0x38] sm:$0xff]  ;;  %s114_s14 = sshll.u32 %s200_s0, 4  ;;  %s202_s17 = smov [#allocation4]   ;;  %s115_s14 = int_to_ptr.vmem [resolvable:$true] %s114_s14 }
   0xa   :  { %86 = vmatpush.msra.mxu1 %v73_v8  ;;  %v68_v13 = vld [vmem:[%s313_s3 + $0x30] sm:$0xff]  ;;  %v67_v14 = vld [vmem:[%s313_s3 + $0x28] sm:$0xff]  ;;  %v66_v15 = vld [vmem:[%s313_s3 + $0x20] sm:$0xff]  ;;  %s125_s18 = sshll.u32 %s202_s17, 4  ;;  %s126_s18 = int_to_ptr.vmem [resolvable:$true] %s125_s18 }
   0xb   :  { %v65_v16 = vld [vmem:[%s313_s3 + $0x18] sm:$0xff]  ;;  %v64_v17 = vld [vmem:[%s313_s3 + $0x10] sm:$0xff]  ;;  %v63_v18 = vld [vmem:[%s313_s3 + $0x8] sm:$0xff] }
   0xc   :  { %87 = vmatpush.msra.mxu1 %v72_v9  ;;  %v62_v19 = vld [vmem:[%s313_s3] sm:$0xff]  ;;  %s116_s3 = sshll.u32 %s315_s5, 4  ;;  %s117_s3 = int_to_ptr.hbm [resolvable:$true] %s116_s3 }
   0xd   :  { %v146_v20 = vld [vmem:[%s312_s2] ss:$0 sm:$0xff]  ;;  %s201_s2 = smov 112  }
   0xe   :  { %88 = vmatpush.msra.mxu1 %v71_v10  ;;  %v147_v25 = vld [vmem:[%s314_s4] ss:$0 sm:$0xff]  ;;  %s127_s4 = sshll.u32 %s316_s6, 4  ;;  %s128_s4 = int_to_ptr.hbm [resolvable:$true] %s127_s4 }
  0x10   :  { %89 = vmatpush.msra.mxu1 %v70_v11 }
  0x12   :  { %90 = vmatpush.msra.mxu1 %v69_v12 }
  0x14   :  { %91 = vmatpush.msra.mxu1 %v68_v13 }
  0x16   :  { %92 = vmatpush.msra.mxu1 %v67_v14 }
  0x18   :  { %93 = vmatpush.msra.mxu1 %v66_v15 }
  0x1a   :  { %94 = vmatpush.msra.mxu1 %v65_v16 }
  0x1c   :  { %95 = vmatpush.msra.mxu1 %v64_v17 }
  0x1e   :  { %96 = vmatpush.msra.mxu1 %v63_v18 }
  0x20   :  { %97 = vmatpush.msra.mxu1 %v62_v19 }
  0x84   :  { %v57_v21 = vpop.f32.mrf.mxu0 }
  0x85   :  { %v58_v22 = vadd.f32 %v146_v20, %v57_v21 }
  0x87   :  { %v60_v23 = vmul.f32 0.01, %v58_v22 }
  0x89   :  { %v61_v24 = vmax.f32 %v58_v22, %v60_v23 }
  0x8b   :  { %98 = vmatmul.f32.vlgmr.msra.gmra.mxu1 %v61_v24 }
 0x108   :  { %v99_v26 = vpop.f32.mrf.mxu1 }
 0x109   :  { %v100_v27 = vadd.f32 %v147_v25, %v99_v26 }
 0x10b   :  { %105 = vrot.lane.b32.xlu0 %v100_v27, %s201_s2  ;;  %103 = vst.msk [vmem:[#allocation2] sm:$0xff] %vm102_vm2, %v100_v27 }
 0x10c   :  { %119 = dma.vmem_to_hbm [thread:$0]  %s115_s14, 128, %s117_s3, [#allocation3]  }
 0x17d   :  { %v106_v28 = vpop.permute.xlu0 %105 }
 0x17e   :  { %108 = vst.msk [vmem:[#allocation4] sm:$0xff] %vm102_vm2, %v106_v28 }
 0x17f   :  { %130 = dma.vmem_to_hbm [thread:$0]  %s126_s18, 128, %s128_s4, [#allocation5]  }
 0x180   :  { %196 = dma.done.wait [#allocation3], 128  }
 0x181   :  { %197 = vsyncadd [#allocation3], 4294967168 }
 0x182   :  { %198 = dma.done.wait [#allocation5], 128  }
 0x183   :  { %199 = vsyncadd [#allocation5], 4294967168 }
 0x184   :  { %139 = vsyncpa [#allocation3], 1 }
 0x185   :  { %140 = vsyncpa [#allocation5], 1 }

</bundles_post_ra>
